<compile_context>
chip_gen: v5e
topology: v5e:2x2
jax: 0.10.0
libtpu: 0.0.40
codegen_flags: <defaults>
</compile_context>

<pallas_src>
import functools
import math

import jax
import jax.numpy as jnp
from jax import lax
from jax.experimental import pallas as pl
from jax.experimental.pallas import tpu as pltpu


def _round_up(n, m):
    return ((n + m - 1) // m) * m


# --------------------------------------------------------------------------
# Fast path: N and K collapsed into a single tile, grid over rows only.
# --------------------------------------------------------------------------
def _make_fused_kernel(*, norm, use_bias):
    def kernel(*refs):
        it = iter(refs)
        x_ref = next(it)                       # (tm, K)  activations
        w_ref = next(it)                       # (K, N)   weight, [K,N] MXU feed
        b_ref = next(it) if use_bias else None  # (1, N)   f32 bias
        o_ref = next(it)                       # (tm, N)  output

        x = x_ref[...]                          # native dtype -> MXU, f32 acc
        y = jnp.dot(x, w_ref[...], preferred_element_type=jnp.float32)
        if norm:
            xf = x.astype(jnp.float32)
            ssq = jnp.sum(xf * xf, axis=1, keepdims=True)
            y = y * lax.rsqrt(ssq)              # rsqrt*mul (EUP) not sqrt+div
        if use_bias:
            y = y + b_ref[...]
        o_ref[...] = y.astype(o_ref.dtype)

    return kernel


# --------------------------------------------------------------------------
# General fallback: (M, N, K) grid, K ("arbitrary") innermost.
# --------------------------------------------------------------------------
def _make_ktiled_kernel(*, norm, use_bias, guard_ssq, acc_in_output):
    def kernel(*refs):
        it = iter(refs)
        x_ref = next(it)                        # (tm, tk)
        w_ref = next(it)                        # (tk, tn)  [K,N] feed
        b_ref = next(it) if use_bias else None  # (1, tn)   f32
        o_ref = next(it)                        # (tm, tn)
        acc_ref = o_ref if acc_in_output else next(it)   # f32 accumulator
        ssq_ref = next(it) if norm else None              # (tm, 1) f32

        j = pl.program_id(1)
        k = pl.program_id(2)
        nk = pl.num_programs(2)

        @pl.when(k == 0)
        def _init_acc():
            acc_ref[...] = jnp.zeros_like(acc_ref)

        x = x_ref[...]
        acc_ref[...] += jnp.dot(x, w_ref[...], preferred_element_type=jnp.float32)

        if norm:
            def _acc_ssq():
                xf = x.astype(jnp.float32)
                ssq_ref[...] += jnp.sum(xf * xf, axis=1, keepdims=True)

            if guard_ssq:
                # ssq depends only on (i, k) -> compute once per row block
                # (requires the j grid axis to be "arbitrary", not megacore).
                @pl.when(jnp.logical_and(j == 0, k == 0))
                def _init_ssq():
                    ssq_ref[...] = jnp.zeros_like(ssq_ref)

                pl.when(j == 0)(_acc_ssq)
            else:
                @pl.when(k == 0)
                def _init_ssq():
                    ssq_ref[...] = jnp.zeros_like(ssq_ref)

                _acc_ssq()

        @pl.when(k == nk - 1)
        def _finalize():
            y = acc_ref[...]
            if norm:
                y = y * lax.rsqrt(ssq_ref[...])
            if use_bias:
                y = y + b_ref[...]
            o_ref[...] = y.astype(o_ref.dtype)

    return kernel


# --------------------------------------------------------------------------
# Wrapper
# --------------------------------------------------------------------------
def rle_linear_forward(x, weight, bias=None, *, norm=True, use_bias=True,
                       tiles=None):
    """x: (B, C_in), weight: (C_out, C_in) [PyTorch layout], bias: (C_out,).

    tiles: optional (tm, tn, tk) override that forces the general K/N-tiled
    fallback (used for testing that path at small sizes).
    """
    B, C_in = x.shape
    C_out, C_in_w = weight.shape
    assert C_in == C_in_w, "weight / input feature mismatch"
    if bias is None:
        use_bias = False

    out_dtype = x.dtype
    x_item = jnp.dtype(x.dtype).itemsize
    w_item = jnp.dtype(weight.dtype).itemsize
    o_item = jnp.dtype(out_dtype).itemsize

    # dtype-aware sublane multiple for the row (second-to-last) axis:
    # 8 for f32, 16 for bf16, 32 for int8/fp8.
    sub_m = max(8, 32 // x_item)

    # Per-generation VMEM budget (v5e/v6e: 128 MiB physical -> ~96 MiB limit;
    # v7x: 64 MiB physical -> ~48 MiB limit).
    try:
        vmem_cap = int(pltpu.get_tpu_info().vmem_capacity_bytes)
        if vmem_cap <= 0:
            vmem_cap = 64 << 20
    except Exception:
        vmem_cap = 64 << 20          # conservative default (v7x)
    vmem_limit = min((vmem_cap * 3) // 4, 96 << 20)
    tile_budget = (vmem_limit * 7) // 10          # headroom for compiler scratch

    # Alignment-only padding targets (minimal padding on the fast path).
    M_a = _round_up(max(B, 1), sub_m)
    N_a = _round_up(max(C_out, 1), 128)           # lane-dense output width
    K_a = _round_up(max(C_in, 1), 128)

    def fused_bytes(tm_):
        # double-buffered x/out tiles + resident (double-counted) weight + bias
        return (2 * tm_ * K_a * x_item + 2 * K_a * N_a * w_item
                + 2 * tm_ * N_a * o_item + 2 * N_a * 4
                + (tm_ * 4 if norm else 0))

    # Row-tile selection.
    tm = min(M_a, 512 if x_item >= 4 else 1024)
    tm = _round_up(tm, sub_m)
    # Give the second TensorCore (v7x megacore) work when the row count allows.
    if M_a >= 2 * sub_m and M_a <= tm:
        tm = _round_up((M_a + 1) // 2, sub_m)
    while tm > sub_m and fused_bytes(tm) > tile_budget:
        tm = _round_up(tm // 2, sub_m)

    use_fused = tiles is None and fused_bytes(tm) <= tile_budget

    # ---- weight: transpose ONCE to (C_in, C_out) = [K, N] MXU feed ----------
    # (static parameter; under jit this transpose is hoisted / amortized)
    w_t = weight.T

    flops = 2 * M_a * N_a * K_a + (3 * M_a * K_a if norm else 0)
    bytes_accessed = (M_a * K_a * x_item + K_a * N_a * w_item
                      + M_a * N_a * o_item + (N_a * 4 if use_bias else 0))
    cost = pl.CostEstimate(flops=flops,
                           transcendentals=(M_a if norm else 0),
                           bytes_accessed=bytes_accessed)

    if use_fused:
        # ------------------- collapsed single-step path ----------------------
        tn, tk = N_a, K_a
        M_p, N_p, K_p = _round_up(M_a, tm), N_a, K_a

        x_p = x if (M_p == B and K_p == C_in) else jnp.pad(
            x, ((0, M_p - B), (0, K_p - C_in)))
        w_p = w_t if (K_p == C_in and N_p == C_out) else jnp.pad(
            w_t, ((0, K_p - C_in), (0, N_p - C_out)))

        in_specs = [pl.BlockSpec((tm, K_p), lambda i: (i, 0)),
                    pl.BlockSpec((K_p, N_p), lambda i: (0, 0))]
        operands = [x_p, w_p]
        if use_bias:
            b2 = bias.reshape(1, C_out).astype(jnp.float32)
            b_p = b2 if N_p == C_out else jnp.pad(b2, ((0, 0), (0, N_p - C_out)))
            in_specs.append(pl.BlockSpec((1, N_p), lambda i: (0, 0)))
            operands.append(b_p)

        kernel = _make_fused_kernel(norm=norm, use_bias=use_bias)
        out_padded = pl.pallas_call(
            kernel,
            out_shape=jax.ShapeDtypeStruct((M_p, N_p), out_dtype),
            grid_spec=pltpu.PrefetchScalarGridSpec(
                num_scalar_prefetch=0,
                grid=(M_p // tm,),
                in_specs=in_specs,
                out_specs=pl.BlockSpec((tm, N_p), lambda i: (i, 0)),
            ),
            compiler_params=pltpu.CompilerParams(
                dimension_semantics=("parallel",),
                vmem_limit_bytes=vmem_limit,
            ),
            cost_estimate=cost,
        )(*operands)
    else:
        # --------------------- general K/N-tiled fallback ---------------------
        if tiles is not None:
            tm, tn, tk = tiles
            tm = _round_up(tm, sub_m)
            tn = _round_up(tn, 128)
            tk = _round_up(tk, 128)
        else:
            tn = min(N_a, 512)
            tk = min(K_a, 2048 if x_item <= 2 else 1024)

            def tiled_bytes(tm_, tn_, tk_):
                return (2 * tm_ * tk_ * x_item + 2 * tk_ * tn_ * w_item
                        + 2 * tm_ * tn_ * o_item + 2 * tn_ * 4
                        + tm_ * tn_ * 4 + (tm_ * 4 if norm else 0))

            while tiled_bytes(tm, tn, tk) > tile_budget and tk > 128:
                tk = max(128, _round_up(tk // 2, 128))
            while tiled_bytes(tm, tn, tk) > tile_budget and tn > 128:
                tn = max(128, _round_up(tn // 2, 128))
            while tiled_bytes(tm, tn, tk) > tile_budget and tm > sub_m:
                tm = _round_up(tm // 2, sub_m)

        M_p = _round_up(M_a, tm)
        N_p = _round_up(N_a, tn)
        K_p = _round_up(K_a, tk)
        ni, nj, nk = M_p // tm, N_p // tn, K_p // tk

        x_p = x if (M_p == B and K_p == C_in) else jnp.pad(
            x, ((0, M_p - B), (0, K_p - C_in)))
        w_p = w_t if (K_p == C_in and N_p == C_out) else jnp.pad(
            w_t, ((0, K_p - C_in), (0, N_p - C_out)))

        guard_ssq = bool(norm and nj > 1)
        acc_in_output = jnp.dtype(out_dtype) == jnp.float32

        in_specs = [pl.BlockSpec((tm, tk), lambda i, j, k: (i, k)),
                    pl.BlockSpec((tk, tn), lambda i, j, k: (k, j))]
        operands = [x_p, w_p]
        if use_bias:
            b2 = bias.reshape(1, C_out).astype(jnp.float32)
            b_p = b2 if N_p == C_out else jnp.pad(b2, ((0, 0), (0, N_p - C_out)))
            in_specs.append(pl.BlockSpec((1, tn), lambda i, j, k: (0, j)))
            operands.append(b_p)

        scratch = []
        if not acc_in_output:
            scratch.append(pltpu.VMEM((tm, tn), jnp.float32))  # matmul acc
        if norm:
            scratch.append(pltpu.VMEM((tm, 1), jnp.float32))   # sum(x^2)

        kernel = _make_ktiled_kernel(norm=norm, use_bias=use_bias,
                                     guard_ssq=guard_ssq,
                                     acc_in_output=acc_in_output)
        dim_sem = ("parallel",
                   "arbitrary" if guard_ssq else "parallel",
                   "arbitrary")
        out_padded = pl.pallas_call(
            kernel,
            out_shape=jax.ShapeDtypeStruct((M_p, N_p), out_dtype),
            grid_spec=pltpu.PrefetchScalarGridSpec(
                num_scalar_prefetch=0,
                grid=(ni, nj, nk),
                in_specs=in_specs,
                out_specs=pl.BlockSpec((tm, tn), lambda i, j, k: (i, j)),
                scratch_shapes=scratch,
            ),
            compiler_params=pltpu.CompilerParams(
                dimension_semantics=dim_sem,
                vmem_limit_bytes=vmem_limit,
            ),
            cost_estimate=cost,
        )(*operands)

    # Padded rows of the output contain NaN (rsqrt(0) -> inf, 0*inf); they are
    # sliced off here and never observed by the caller.
    return out_padded[:B, :C_out]


def init_params(key, in_channel, out_channel):
    """Deterministic init matching the PyTorch module's __init__ semantics."""
    k_w, k_b = jax.random.split(key)
    gain = 0.01  # nn.init.xavier_uniform_(weight, gain=0.01)
    limit_w = gain * math.sqrt(6.0 / (in_channel + out_channel))
    weight = jax.random.uniform(
        k_w, (out_channel, in_channel), jnp.float32, -limit_w, limit_w)
    limit_b = 1.0 / math.sqrt(in_channel)  # nn.Linear default bias init
    bias = jax.random.uniform(k_b, (out_channel,), jnp.float32, -limit_b, limit_b)
    return weight, bias


if __name__ == "__main__":
    def ref_forward(x, w, b, norm, use_bias):
        y = x @ w.T
        if norm:
            y = y / jnp.linalg.norm(x, axis=1, keepdims=True)
        if use_bias:
            y = y + b
        return y

    key = jax.random.PRNGKey(0)
    k_x, k_p = jax.random.split(key)

    # --- default module config (norm=True, bias=True), fused fast path -------
    B, C_in, C_out = 8, 32, 16
    x = jax.random.normal(k_x, (B, C_in), jnp.float32)
    weight, bias = init_params(k_p, C_in, C_out)

    y = jax.block_until_ready(rle_linear_forward(x, weight, bias))
    assert y.shape == (B, C_out)
    assert jnp.allclose(y, ref_forward(x, weight, bias, True, True),
                        atol=1e-5, rtol=1e-5), "default config mismatch"

    # --- norm-only and plain-linear configurations ---------------------------
    y_nb = jax.block_until_ready(
        rle_linear_forward(x, weight, bias, norm=True, use_bias=False))
    assert jnp.allclose(y_nb, ref_forward(x, weight, bias, True, False),
                        atol=1e-5, rtol=1e-5)
    y_plain = jax.block_until_ready(
        rle_linear_forward(x, weight, None, norm=False))
    assert jnp.allclose(y_plain, ref_forward(x, weight, bias, False, False),
                        atol=1e-5, rtol=1e-5)

    # --- multi-row-tile grid + padding (row axis split for megacore) ---------
    B2, Ci2, Co2 = 40, 200, 20
    x2 = jax.random.normal(jax.random.PRNGKey(1), (B2, Ci2), jnp.float32)
    w2, b2 = init_params(jax.random.PRNGKey(2), Ci2, Co2)
    y2 = jax.block_until_ready(rle_linear_forward(x2, w2, b2))
    assert jnp.allclose(y2, ref_forward(x2, w2, b2, True, True),
                        atol=1e-4, rtol=1e-4)

    # --- bf16 inputs (16-row sublane rounding, native bf16 MXU feed) ---------
    x2b, w2b = x2.astype(jnp.bfloat16), w2.astype(jnp.bfloat16)
    y2b = jax.block_until_ready(rle_linear_forward(x2b, w2b, b2))
    ref2b = ref_forward(x2b.astype(jnp.float32), w2b.astype(jnp.float32),
                        b2, True, True)
    assert jnp.allclose(y2b.astype(jnp.float32), ref2b, atol=5e-3, rtol=5e-2)

    # --- force the general K/N-tiled fallback (f32: acc lives in output) -----
    B5, Ci5, Co5 = 16, 200, 160
    x5 = jax.random.normal(jax.random.PRNGKey(3), (B5, Ci5), jnp.float32)
    w5, b5 = init_params(jax.random.PRNGKey(4), Ci5, Co5)
    y5 = jax.block_until_ready(
        rle_linear_forward(x5, w5, b5, tiles=(8, 128, 128)))
    assert jnp.allclose(y5, ref_forward(x5, w5, b5, True, True),
                        atol=1e-4, rtol=1e-4)

    # --- tiled fallback with bf16 output (f32 accumulator scratch path) ------
    x5b, w5b = x5.astype(jnp.bfloat16), w5.astype(jnp.bfloat16)
    y6 = jax.block_until_ready(
        rle_linear_forward(x5b, w5b, b5, tiles=(16, 128, 128)))
    ref6 = ref_forward(x5b.astype(jnp.float32), w5b.astype(jnp.float32),
                       b5, True, True)
    assert jnp.allclose(y6.astype(jnp.float32), ref6, atol=5e-3, rtol=5e-2)

    print("KERNEL_OK")
</pallas_src>

<mosaic_0001>
module attributes {stable_mosaic.version = 11 : i64} {
  func.func @kernel(%arg0: i32, %arg1: memref<8x128xf32, #tpu.memory_space<vmem>>, %arg2: memref<128x128xf32, #tpu.memory_space<vmem>>, %arg3: memref<1x128xf32, #tpu.memory_space<vmem>>, %arg4: memref<8x128xf32, #tpu.memory_space<vmem>>) attributes {dimension_semantics = [#tpu.dimension_semantics<parallel>], iteration_bounds = array<i64: 1>, scalar_prefetch = 0 : i64, scratch_operands = 0 : i64, tpu.core_type = #tpu.core_type<tc>, window_params = [{transform_indices = @transform_0, window_bounds = array<i64: 8, 128>}, {pipeline_mode = #tpu.pipeline_mode<synchronous>, transform_indices = @transform_1, window_bounds = array<i64: 128, 128>}, {pipeline_mode = #tpu.pipeline_mode<synchronous>, transform_indices = @transform_2, window_bounds = array<i64: 1, 128>}, {transform_indices = @transform_3, window_bounds = array<i64: 8, 128>}]} {
    %c0 = arith.constant 0 : index
    %c0_0 = arith.constant 0 : index
    %0 = vector.load %arg1[%c0, %c0_0] : memref<8x128xf32, #tpu.memory_space<vmem>>, vector<8x128xf32>
    %c0_1 = arith.constant 0 : index
    %c0_2 = arith.constant 0 : index
    %1 = vector.load %arg2[%c0_1, %c0_2] : memref<128x128xf32, #tpu.memory_space<vmem>>, vector<128x128xf32>
    %cst = arith.constant dense<0.000000e+00> : vector<8x128xf32>
    %2 = tpu.matmul %0, %1, %cst {dimension_numbers = #tpu.dot_dimension_numbers<[1], [0], [0], [1], [0, 0, 1, 1], [], []>} : vector<8x128xf32>, vector<128x128xf32>, vector<8x128xf32> -> vector<8x128xf32>
    %3 = arith.mulf %0, %0 : vector<8x128xf32>
    %cst_3 = arith.constant dense<0.000000e+00> : vector<8xf32>
    %4 = vector.multi_reduction <add>, %3, %cst_3 [1] : vector<8x128xf32> to vector<8xf32>
    %5 = vector.shape_cast %4 : vector<8xf32> to vector<8x1xf32>
    %6 = math.rsqrt %5 : vector<8x1xf32>
    %7 = vector.broadcast %6 : vector<8x1xf32> to vector<8x128xf32>
    %8 = arith.mulf %2, %7 : vector<8x128xf32>
    %c0_4 = arith.constant 0 : index
    %c0_5 = arith.constant 0 : index
    %9 = vector.load %arg3[%c0_4, %c0_5] : memref<1x128xf32, #tpu.memory_space<vmem>>, vector<1x128xf32>
    %10 = vector.broadcast %9 : vector<1x128xf32> to vector<8x128xf32>
    %11 = arith.addf %8, %10 : vector<8x128xf32>
    %c0_6 = arith.constant 0 : index
    %c0_7 = arith.constant 0 : index
    %12 = vector.load %arg4[%c0_6, %c0_7] : memref<8x128xf32, #tpu.memory_space<vmem>>, vector<8x128xf32>
    tpu.vector_store %arg4[%c0_6, %c0_7], %11 {strides = array<i32>} : memref<8x128xf32, #tpu.memory_space<vmem>>, vector<8x128xf32>,
    return
  }
  func.func @transform_0(%arg0: i32) -> (i32, i32) {
    %c0_i32 = arith.constant 0 : i32
    %c0_i32_0 = arith.constant 0 : i32
    return %arg0, %c0_i32 : i32, i32
  }
  func.func @transform_1(%arg0: i32) -> (i32, i32) {
    %c0_i32 = arith.constant 0 : i32
    %c0_i32_0 = arith.constant 0 : i32
    %c0_i32_1 = arith.constant 0 : i32
    return %c0_i32, %c0_i32_0 : i32, i32
  }
  func.func @transform_2(%arg0: i32) -> (i32, i32) {
    %c0_i32 = arith.constant 0 : i32
    %c0_i32_0 = arith.constant 0 : i32
    %c0_i32_1 = arith.constant 0 : i32
    return %c0_i32, %c0_i32_0 : i32, i32
  }
  func.func @transform_3(%arg0: i32) -> (i32, i32) {
    %c0_i32 = arith.constant 0 : i32
    %c0_i32_0 = arith.constant 0 : i32
    return %arg0, %c0_i32 : i32, i32
  }
}

</mosaic_0001>

<bundles_post_ra>
// kernel: tpu_custom_call.1
= control target key start
LH: loop header
LB: loop body
LE: loop exit
PB: predicated region body
PF: predicated region fallthrough
CT: control target
= control target key end

     0   :  { %8 = vsyncpa [#allocation3], 0  ;;  %s243_s0 = inlined_call_operand.hbm [shape: f32[8,128], index: 0, kind: input, shape index: {}]   ;;  %s244_s1 = inlined_call_operand.hbm [shape: f32[128,128], index: 1, kind: input, shape index: {}]   ;;  %s245_s2 = inlined_call_operand.vmem [shape: f32[1,128], index: 2, kind: input, shape index: {}]   ;;  %s246_s3 = inlined_call_operand.hbm [shape: f32[8,128], index: 3, kind: output, shape index: {}]  }
   0x1   :  { %9 = vsyncpa [#allocation6], 0 }
   0x2   :  { %10 = vsyncpa [#allocation4], 0  ;;  %s16_s14 = sshll.u32 %s243_s0, 4  ;;  %s206_s15 = smov [#allocation2]   ;;  %s17_s14 = int_to_ptr.hbm [resolvable:$true] %s16_s14 }
   0x3   :  { %s18_s16 = sshll.u32 %s206_s15, 4  ;;  %s26_s19 = sshll.u32 %s244_s1, 4  ;;  %s19_s16 = int_to_ptr.vmem [resolvable:$true] %s18_s16  ;;  %s27_s19 = int_to_ptr.hbm [resolvable:$true] %s26_s19 }
   0x4   :  { %21 = dma.hbm_to_vmem [thread:$0]  %s17_s14, 128, %s19_s16, [#allocation3]  }
   0x5   :  { %s207_s20 = smov [#allocation5]   ;;  %s208_s22 = smov 128  }
   0x6   :  { %s28_s21 = sshll.u32 %s207_s20, 4  ;;  %s209_s23 = smov 8   ;;  %s29_s21 = int_to_ptr.vmem [resolvable:$true] %s28_s21 }
   0x7   :  { %34 = dma.hbm_to_vmem [thread:$0]  %s27_s19, 2048, %s29_s21, [#allocation6], %s208_s22, %s208_s22, %s209_s23  }
   0x8   :  { %200 = dma.done.wait [#allocation3], 128  }
   0x9   :  { %201 = vsyncadd [#allocation3], 4294967168 }
   0xa   :  { %202 = dma.done.wait [#allocation6], 2048  }
   0xb   :  { %203 = vsyncadd [#allocation6], 4294965248  ;;  %v61_v0 = vld [vmem:[#allocation5 + $0x78] sm:$0xff]  ;;  %v60_v1 = vld [vmem:[#allocation5 + $0x70] sm:$0xff]  ;;  %s210_s24 = smov [#allocation7]   ;;  %s109_s28 = sshll.u32 %s246_s3, 4  ;;  %s110_s28 = int_to_ptr.hbm [resolvable:$true] %s109_s28 }
   0xc   :  { %62 = vmatpush.msra.mxu0 %v61_v0  ;;  %v45_v2 = vld [vmem:[#allocation2] sm:$0xff]  ;;  %v59_v3 = vld [vmem:[#allocation5 + $0x68] sm:$0xff]  ;;  %v58_v5 = vld [vmem:[#allocation5 + $0x60] sm:$0xff]  ;;  %s107_s25 = sshll.u32 %s210_s24, 4  ;;  %s108_s25 = int_to_ptr.vmem [resolvable:$true] %s107_s25 }
   0xd   :  { %v82_v4 = vmul.f32 %v45_v2, %v45_v2  ;;  %v57_v6 = vld [vmem:[#allocation5 + $0x58] sm:$0xff]  ;;  %v56_v7 = vld [vmem:[#allocation5 + $0x50] sm:$0xff]  ;;  %v55_v8 = vld [vmem:[#allocation5 + $0x48] sm:$0xff] }
   0xe   :  { %63 = vmatpush.msra.mxu0 %v60_v1  ;;  %v54_v9 = vld [vmem:[#allocation5 + $0x40] sm:$0xff]  ;;  %v53_v10 = vld [vmem:[#allocation5 + $0x38] sm:$0xff]  ;;  %v52_v11 = vld [vmem:[#allocation5 + $0x30] sm:$0xff] }
   0xf   :  { %83 = vadd.xlane.f32.xlu0 %v82_v4  ;;  %v51_v12 = vld [vmem:[#allocation5 + $0x28] sm:$0xff]  ;;  %v50_v13 = vld [vmem:[#allocation5 + $0x20] sm:$0xff]  ;;  %v49_v14 = vld [vmem:[#allocation5 + $0x18] sm:$0xff] }
  0x10   :  { %64 = vmatpush.msra.mxu0 %v59_v3  ;;  %v48_v15 = vld [vmem:[#allocation5 + $0x10] sm:$0xff]  ;;  %v47_v16 = vld [vmem:[#allocation5 + $0x8] sm:$0xff]  ;;  %v46_v17 = vld [vmem:[#allocation5] sm:$0xff] }
  0x11   :  { %v125_v25 = vld [vmem:[%s245_s2] ss:$0 sm:$0xff] }
  0x12   :  { %65 = vmatpush.msra.mxu0 %v58_v5 }
  0x14   :  { %66 = vmatpush.msra.mxu0 %v57_v6 }
  0x16   :  { %67 = vmatpush.msra.mxu0 %v56_v7 }
  0x18   :  { %68 = vmatpush.msra.mxu0 %v55_v8 }
  0x1a   :  { %69 = vmatpush.msra.mxu0 %v54_v9 }
  0x1c   :  { %70 = vmatpush.msra.mxu0 %v53_v10 }
  0x1e   :  { %71 = vmatpush.msra.mxu0 %v52_v11 }
  0x20   :  { %72 = vmatpush.msra.mxu0 %v51_v12 }
  0x22   :  { %73 = vmatpush.msra.mxu0 %v50_v13 }
  0x24   :  { %74 = vmatpush.msra.mxu0 %v49_v14 }
  0x26   :  { %75 = vmatpush.msra.mxu0 %v48_v15 }
  0x28   :  { %76 = vmatpush.msra.mxu0 %v47_v16 }
  0x2a   :  { %77 = vmatpush.msra.mxu0 %v46_v17 }
  0x2b   :  { %78 = vmatmul.f32.vlgmr.msra.gmra.mxu0 %v45_v2 }
  0x82   :  { %v84_v18 = vpop.xlane.xlu0 %83 }
  0x83   :  { %126 = vrsqrt.f32 %v84_v18  ;;  %vm91_vm0 = vweird.f32 %v84_v18 }
  0x89   :  { %v127_v19 = vpop.eup %126 }
  0x8a   :  { %v86_v20 = vmul.f32 %v127_v19, %v84_v18  ;;  %vm92_vm1 = vweird.f32 %v127_v19 }
  0x8b   :  { %vm93_vm2 = vmor %vm91_vm0, %vm92_vm1 }
  0x8c   :  { %v87_v21 = vmul.f32 %v127_v19, %v86_v20 }
  0x8e   :  { %v88_v22 = vmul.f32 0.5, %v87_v21 }
  0x90   :  { %v89_v23 = vsub.f32 1.5, %v88_v22 }
  0x92   :  { %v90_v24 = vmul.f32 %v127_v19, %v89_v23 }
  0x94   :  { %v94_v27 = vsel %vm93_vm2, %v127_v19, %v90_v24 }
  0xa8   :  { %v79_v26 = vpop.f32.mrf.mxu0 }
  0xa9   :  { %v95_v28 = vmul.f32 %v94_v27, %v79_v26 }
  0xab   :  { %v100_v29 = vadd.f32 %v125_v25, %v95_v28 }
  0xad   :  { %101 = vst [vmem:[#allocation7] sm:$0xff] %v100_v29 }
  0xae   :  { %112 = dma.vmem_to_hbm [thread:$0]  %s108_s25, 128, %s110_s28, [#allocation4]  }
  0xaf   :  { %204 = dma.done.wait [#allocation4], 128  }
  0xb0   :  { %205 = vsyncadd [#allocation4], 4294967168 }
  0xb1   :  { %117 = vsyncpa [#allocation3], 1 }
  0xb2   :  { %118 = vsyncpa [#allocation6], 1 }
  0xb3   :  { %119 = vsyncpa [#allocation4], 1 }

</bundles_post_ra>
